<compile_context>
chip_gen: v5e
topology: v5e:2x2
jax: 0.10.0
libtpu: 0.0.40
codegen_flags: <defaults>
</compile_context>

<pallas_src>
import math
import jax
import jax.numpy as jnp
from jax.experimental import pallas as pl
from jax.experimental.pallas import tpu as pltpu

SENSOR_DIM = 16      # SENSOR_SHAPE[0] (synthetic choice)
OUT_DIM = 256


def _round_up(n, m):
    return ((n + m - 1) // m) * m


def _linear_kernel(x_ref, w_ref, b_ref, o_ref):
    # Hot path: MXU matmul + bias add, f32 accumulation.
    acc = jnp.dot(x_ref[...], w_ref[...], preferred_element_type=jnp.float32)
    o_ref[...] = (acc + b_ref[...]).astype(o_ref.dtype)


def sensor_forward(x, w, b, *, block_b=8192):
    """x: (B, SENSOR_DIM) f32, w: (SENSOR_DIM, OUT_DIM) f32, b: (1, OUT_DIM) f32."""
    B, D = x.shape
    assert w.shape == (D, OUT_DIM) and b.shape == (1, OUT_DIM)
    assert block_b % 8 == 0, "batch tile must be a multiple of the 8-sublane unit"

    # Batch tile: multiple of 8, no larger than block_b, and capped at
    # ~ceil(B/2) so moderate batches still produce a >=2 step grid that
    # megacore (v7x) can shard across both TensorCores.
    half = _round_up(-(-B // 2), 8)          # round_up(ceil(B/2), 8)
    TB = max(8, min(block_b, half))
    grid = (pl.cdiv(B, TB),)                 # ragged last tile handled by Pallas masking

    # Double-buffered VMEM working set; the x block is lane-padded 16 -> 128.
    x_cols_padded = _round_up(D, 128)
    vmem_bytes = 2 * 4 * (TB * x_cols_padded        # x blocks
                          + TB * OUT_DIM            # output blocks
                          + D * OUT_DIM + OUT_DIM)  # resident w + b
    vmem_limit = int(min(max(vmem_bytes + (4 << 20), 16 << 20), 48 << 20))

    cost = pl.CostEstimate(
        flops=2 * B * D * OUT_DIM,
        transcendentals=0,
        bytes_accessed=(B * D + D * OUT_DIM + OUT_DIM + B * OUT_DIM) * 4,
    )

    return pl.pallas_call(
        _linear_kernel,
        out_shape=jax.ShapeDtypeStruct((B, OUT_DIM), jnp.float32),
        grid=grid,
        in_specs=[
            pl.BlockSpec((TB, D), lambda i: (i, 0)),         # streamed per step
            pl.BlockSpec((D, OUT_DIM), lambda i: (0, 0)),    # VMEM-resident weight
            pl.BlockSpec((1, OUT_DIM), lambda i: (0, 0)),    # VMEM-resident bias
        ],
        out_specs=pl.BlockSpec((TB, OUT_DIM), lambda i: (i, 0)),
        compiler_params=pltpu.CompilerParams(
            dimension_semantics=("parallel",),
            vmem_limit_bytes=vmem_limit),
        cost_estimate=cost,
    )(x, w, b)


def init_params(key, in_dim=SENSOR_DIM, out_dim=OUT_DIM):
    # Deterministic init mirroring nn.Linear: U(-1/sqrt(in), 1/sqrt(in)).
    kw, kb = jax.random.split(key)
    bound = 1.0 / math.sqrt(in_dim)
    w = jax.random.uniform(kw, (in_dim, out_dim), jnp.float32, -bound, bound)
    b = jax.random.uniform(kb, (1, out_dim), jnp.float32, -bound, bound)
    return w, b


def _reference(x, w, b):
    # High-precision XLA reference (avoids default-precision MXU drift).
    return jnp.dot(x, w, precision=jax.lax.Precision.HIGHEST) + b


if __name__ == "__main__":
    key = jax.random.PRNGKey(0)
    k_x1, k_x2, k_p = jax.random.split(key, 3)
    w, b = init_params(k_p)

    # Case 1: tiny batch, matches the original module's typical use.
    batch = 8
    sensor = jax.random.normal(k_x1, (batch, SENSOR_DIM), jnp.float32)
    obs = {"sensor": sensor}  # TODO(synk): numpy->torch .to('cuda') conversion is a no-op under JAX.
    out = jax.block_until_ready(sensor_forward(obs["sensor"], w, b))
    ref = _reference(obs["sensor"], w, b)
    assert out.shape == (batch, OUT_DIM)
    assert jnp.allclose(out, ref, atol=5e-3, rtol=5e-3)

    # Case 2: ragged batch exercising the multi-step grid + masked last tile
    # (520 rows, TB=256 -> 3 grid steps, last tile only 8 valid rows).
    batch2 = 520
    sensor2 = jax.random.normal(k_x2, (batch2, SENSOR_DIM), jnp.float32)
    out2 = jax.block_until_ready(sensor_forward(sensor2, w, b, block_b=256))
    ref2 = _reference(sensor2, w, b)
    assert out2.shape == (batch2, OUT_DIM)
    assert jnp.allclose(out2, ref2, atol=5e-3, rtol=5e-3)

    print("KERNEL_OK")
</pallas_src>

<mosaic_0001>
module attributes {stable_mosaic.version = 11 : i64} {
  func.func @_linear_kernel(%arg0: i32, %arg1: memref<8x16xf32, #tpu.memory_space<vmem>>, %arg2: memref<16x256xf32, #tpu.memory_space<vmem>>, %arg3: memref<1x256xf32, #tpu.memory_space<vmem>>, %arg4: memref<8x256xf32, #tpu.memory_space<vmem>>) attributes {dimension_semantics = [#tpu.dimension_semantics<parallel>], iteration_bounds = array<i64: 1>, scalar_prefetch = 0 : i64, scratch_operands = 0 : i64, tpu.core_type = #tpu.core_type<tc>, window_params = [{transform_indices = @transform_0, window_bounds = array<i64: 8, 16>}, {pipeline_mode = #tpu.pipeline_mode<synchronous>, transform_indices = @transform_1, window_bounds = array<i64: 16, 256>}, {pipeline_mode = #tpu.pipeline_mode<synchronous>, transform_indices = @transform_2, window_bounds = array<i64: 1, 256>}, {transform_indices = @transform_3, window_bounds = array<i64: 8, 256>}]} {
    %c0 = arith.constant 0 : index
    %c0_0 = arith.constant 0 : index
    %0 = vector.load %arg1[%c0, %c0_0] : memref<8x16xf32, #tpu.memory_space<vmem>>, vector<8x16xf32>
    %c0_1 = arith.constant 0 : index
    %c0_2 = arith.constant 0 : index
    %1 = vector.load %arg2[%c0_1, %c0_2] : memref<16x256xf32, #tpu.memory_space<vmem>>, vector<16x256xf32>
    %cst = arith.constant dense<0.000000e+00> : vector<8x256xf32>
    %2 = tpu.matmul %0, %1, %cst {dimension_numbers = #tpu.dot_dimension_numbers<[1], [0], [0], [1], [0, 0, 1, 1], [], []>} : vector<8x16xf32>, vector<16x256xf32>, vector<8x256xf32> -> vector<8x256xf32>
    %c0_3 = arith.constant 0 : index
    %c0_4 = arith.constant 0 : index
    %3 = vector.load %arg3[%c0_3, %c0_4] : memref<1x256xf32, #tpu.memory_space<vmem>>, vector<1x256xf32>
    %4 = vector.broadcast %3 : vector<1x256xf32> to vector<8x256xf32>
    %5 = arith.addf %2, %4 : vector<8x256xf32>
    %c0_5 = arith.constant 0 : index
    %c0_6 = arith.constant 0 : index
    %6 = vector.load %arg4[%c0_5, %c0_6] : memref<8x256xf32, #tpu.memory_space<vmem>>, vector<8x256xf32>
    tpu.vector_store %arg4[%c0_5, %c0_6], %5 {strides = array<i32>} : memref<8x256xf32, #tpu.memory_space<vmem>>, vector<8x256xf32>,
    return
  }
  func.func @transform_0(%arg0: i32) -> (i32, i32) {
    %c0_i32 = arith.constant 0 : i32
    %c0_i32_0 = arith.constant 0 : i32
    return %arg0, %c0_i32 : i32, i32
  }
  func.func @transform_1(%arg0: i32) -> (i32, i32) {
    %c0_i32 = arith.constant 0 : i32
    %c0_i32_0 = arith.constant 0 : i32
    %c0_i32_1 = arith.constant 0 : i32
    return %c0_i32, %c0_i32_0 : i32, i32
  }
  func.func @transform_2(%arg0: i32) -> (i32, i32) {
    %c0_i32 = arith.constant 0 : i32
    %c0_i32_0 = arith.constant 0 : i32
    %c0_i32_1 = arith.constant 0 : i32
    return %c0_i32, %c0_i32_0 : i32, i32
  }
  func.func @transform_3(%arg0: i32) -> (i32, i32) {
    %c0_i32 = arith.constant 0 : i32
    %c0_i32_0 = arith.constant 0 : i32
    return %arg0, %c0_i32 : i32, i32
  }
}

</mosaic_0001>

<bundles_post_ra>
// kernel: tpu_custom_call.1
= control target key start
LH: loop header
LB: loop body
LE: loop exit
PB: predicated region body
PF: predicated region fallthrough
CT: control target
= control target key end

     0   :  { %8 = vsyncpa [#allocation3], 0  ;;  %s281_s0 = inlined_call_operand.hbm [shape: f32[8,16], index: 0, kind: input, shape index: {}]   ;;  %s282_s1 = inlined_call_operand.hbm [shape: f32[16,256], index: 1, kind: input, shape index: {}]   ;;  %s283_s2 = inlined_call_operand.hbm [shape: f32[1,256], index: 2, kind: input, shape index: {}]   ;;  %s284_s3 = inlined_call_operand.hbm [shape: f32[8,256], index: 3, kind: output, shape index: {}]  }
   0x1   :  { %9 = vsyncpa [#allocation6], 0  ;;  %s26_s14 = sshll.u32 %s282_s1, 4  ;;  %s27_s14 = int_to_ptr.hbm [resolvable:$true] %s26_s14 }
   0x2   :  { %10 = vsyncpa [#allocation4], 0  ;;  %s243_s15 = smov [#allocation5]   ;;  %s16_s19 = sshll.u32 %s281_s0, 4  ;;  %s17_s19 = int_to_ptr.hbm [resolvable:$true] %s16_s19 }
   0x3   :  { %s28_s16 = sshll.u32 %s243_s15, 4  ;;  %s244_s20 = smov 256   ;;  %s29_s16 = int_to_ptr.vmem [resolvable:$true] %s28_s16 }
   0x4   :  { %s245_s21 = smov 16   ;;  %s246_s22 = smov [#allocation2]  }
   0x5   :  { %34 = dma.hbm_to_vmem [thread:$0]  %s27_s14, 512, %s29_s16, [#allocation6], %s244_s20, %s244_s20, %s245_s21  }
   0x6   :  { %s18_s23 = sshll.u32 %s246_s22, 4  ;;  %s40_s26 = sshll.u32 %s283_s2, 4  ;;  %s19_s23 = int_to_ptr.vmem [resolvable:$true] %s18_s23  ;;  %s41_s26 = int_to_ptr.hbm [resolvable:$true] %s40_s26 }
   0x7   :  { %21 = dma.hbm_to_vmem [thread:$0]  %s17_s19, 128, %s19_s23, [#allocation3]  }
   0x8   :  { %s247_s1 = smov [#allocation7]  }
   0x9   :  { %s42_s27 = sshll.u32 %s247_s1, 4  ;;  %s43_s27 = int_to_ptr.vmem [resolvable:$true] %s42_s27 }
   0xa   :  { %45 = dma.hbm_to_vmem [thread:$0]  %s41_s26, 32, %s43_s27, [#allocation6]  }
   0xb   :  { %237 = dma.done.wait [#allocation3], 128  }
   0xc   :  { %238 = vsyncadd [#allocation3], 4294967168 }
   0xd   :  { %239 = dma.done.wait [#allocation6], 544  }
   0xe   :  { %240 = vsyncadd [#allocation6], 4294966752  ;;  %v61_v0 = vld [vmem:[#allocation5 + $0x10] sm:$0xff]  ;;  %v62_v1 = vld [vmem:[#allocation5 + $0x18] sm:$0xff]  ;;  %vm69_vm0 = vcmask 130048   ;;  %s248_s0 = smov [#allocation8]  }
   0xf   :  { %v59_v2 = vld [vmem:[#allocation5] sm:$0xff]  ;;  %87 = vmatpush.msra.mxu0 %v61_v0  ;;  %107 = vmatpush.msra.mxu1 %v62_v1  ;;  %v60_v3 = vld [vmem:[#allocation5 + $0x8] sm:$0xff]  ;;  %v58_v4 = vld [vmem:[#allocation2] sm:$0xff]  ;;  %s120_s2 = sshll.u32 %s248_s0, 4  ;;  %s122_s30 = sshll.u32 %s284_s3, 4  ;;  %s121_s2 = int_to_ptr.vmem [resolvable:$true] %s120_s2  ;;  %s123_s30 = int_to_ptr.hbm [resolvable:$true] %s122_s30 }
  0x10   :  { %v63_v5 = vld [vmem:[#allocation7] sm:$0x3] }
  0x11   :  { %88 = vmatpush.msra.mxu0 %v59_v2  ;;  %108 = vmatpush.msra.mxu1 %v60_v3  ;;  %v65_v6 = vperm.slane %v63_v5, 0  ;;  %v66_v7 = vperm.slane %v63_v5, 1 }
  0x12   :  { %133 = vmatmul.msk.f32.vlgmr.msra.gmra.mxu0 %vm69_vm0, %v58_v4  ;;  %134 = vmatmul.msk.f32.vlgmr.msra.gmra.mxu1 %vm69_vm0, %v58_v4 }
  0x8f   :  { %v90_v8 = vpop.f32.mrf.mxu0  ;;  %v110_v9 = vpop.f32.mrf.mxu1 }
  0x90   :  { %v91_v10 = vadd.f32 %v90_v8, %v65_v6  ;;  %v111_v11 = vadd.f32 %v110_v9, %v66_v7 }
  0x92   :  { %113 = vst [vmem:[#allocation8] sm:$0xff] %v91_v10 }
  0x93   :  { %114 = vst [vmem:[#allocation8 + $0x8] sm:$0xff] %v111_v11 }
  0x94   :  { %125 = dma.vmem_to_hbm [thread:$0]  %s121_s2, 256, %s123_s30, [#allocation4]  }
  0x95   :  { %241 = dma.done.wait [#allocation4], 256  }
  0x96   :  { %242 = vsyncadd [#allocation4], 4294967040 }
  0x97   :  { %130 = vsyncpa [#allocation3], 1 }
  0x98   :  { %131 = vsyncpa [#allocation6], 1 }
  0x99   :  { %132 = vsyncpa [#allocation4], 1 }

</bundles_post_ra>
